<compile_context>
chip_gen: v7x
topology: tpu7x:2x2x1
jax: 0.10.0
libtpu: 0.0.40
codegen_flags: <defaults>
</compile_context>

<pallas_src>
import functools

import numpy as np
import jax
import jax.numpy as jnp
from jax.experimental import pallas as pl
from jax.experimental.pallas import tpu as pltpu

_MAX_OUTSTANDING = 4  # DMA window size / semaphore pool depth


def _plan_chunks(n, f, itemsize, *, max_chunks=16, min_chunk_bytes=4 << 20):
    """Static (trace-time) chunk plan: (row_chunks, col_chunks).

    Chunks are equal-sized (divisors of n / f), each >= ~min_chunk_bytes when
    the array is large, and at most max_chunks total so the unrolled DMA-issue
    loop stays short.  Column chunk widths are kept multiples of 128 so every
    DMA slice lands on a lane/tile boundary in HBM.
    """
    total_bytes = max(1, n * f * itemsize)
    want = int(min(max_chunks, max(1, total_bytes // min_chunk_bytes)))

    # Split rows first (contiguous slabs of the flattened (N, F) output).
    row_chunks = min(n, want)
    while row_chunks > 1 and n % row_chunks != 0:
        row_chunks -= 1

    # If rows alone don't give enough DMA parallelism, also split columns.
    col_chunks = 1
    if row_chunks < want and f >= 256:
        target = max(1, want // row_chunks)
        cc = min(target, f // 128)
        while cc > 1 and not (f % cc == 0 and (f // cc) % 128 == 0):
            cc -= 1
        col_chunks = max(1, cc)
    return row_chunks, col_chunks


def _flatten_dma_kernel(x_ref, o_ref, sems, *, row_chunks, col_chunks):
    """HBM->HBM copy of the flattened (N, F) array via chunked async DMA.

    No VMEM staging: each chunk is copied directly between the two HBM
    buffers, with up to _MAX_OUTSTANDING copies in flight (semaphore pool).
    All indices below are static Python ints, so this unrolls to a short,
    fixed sequence of DMA start/wait ops.
    """
    n, f = x_ref.shape
    tr = n // row_chunks           # rows per chunk   (exact divisor)
    tc = f // col_chunks           # cols per chunk   (exact divisor, %128==0)
    num_chunks = row_chunks * col_chunks
    window = min(_MAX_OUTSTANDING, num_chunks)

    copies = []
    for idx in range(num_chunks):
        r = (idx // col_chunks) * tr
        c = (idx % col_chunks) * tc
        cp = pltpu.make_async_copy(
            x_ref.at[pl.ds(r, tr), pl.ds(c, tc)],
            o_ref.at[pl.ds(r, tr), pl.ds(c, tc)],
            sems.at[idx % window],
        )
        if idx >= window:
            copies[idx - window].wait()   # free this semaphore slot first
        cp.start()
        copies.append(cp)
    for idx in range(max(0, num_chunks - window), num_chunks):
        copies[idx].wait()


def flatten(x: jax.Array, materialize: bool = True, *,
            max_chunks=16, min_chunk_bytes=4 << 20) -> jax.Array:
    """Equivalent of torch: x.view(x.size(0), -1).

    materialize=False : metadata-only reshape (XLA does it for free).
    materialize=True  : additionally force a freshly HBM-materialized copy of
                        the flattened result via a chunked HBM->HBM DMA kernel.
    """
    n = x.shape[0]
    f = int(np.prod(x.shape[1:])) if x.ndim > 1 else 1
    out2d = jnp.reshape(x, (n, f))        # row-major == torch .view(N, -1)
    if not materialize or n == 0 or f == 0:
        return out2d

    itemsize = jnp.dtype(x.dtype).itemsize
    row_chunks, col_chunks = _plan_chunks(
        n, f, itemsize, max_chunks=max_chunks, min_chunk_bytes=min_chunk_bytes)

    kernel = functools.partial(
        _flatten_dma_kernel, row_chunks=row_chunks, col_chunks=col_chunks)

    return pl.pallas_call(
        kernel,
        out_shape=jax.ShapeDtypeStruct((n, f), x.dtype),
        in_specs=[pl.BlockSpec(memory_space=pl.ANY)],    # raw HBM ref
        out_specs=pl.BlockSpec(memory_space=pl.ANY),     # raw HBM ref
        scratch_shapes=[pltpu.SemaphoreType.DMA((_MAX_OUTSTANDING,))],
        cost_estimate=pl.CostEstimate(
            flops=0, transcendentals=0,
            bytes_accessed=2 * n * f * itemsize),
    )(out2d)


if __name__ == "__main__":
    key = jax.random.PRNGKey(0)

    # Shapes consistent with a typical conv feature map: N=2, C=4, H=W=16.
    x = jax.random.normal(key, (2, 4, 16, 16), dtype=jnp.float32)
    ref = jnp.reshape(x, (x.shape[0], -1))

    out = jax.block_until_ready(flatten(x))                      # kernel path
    fast = jax.block_until_ready(flatten(x, materialize=False))  # view path
    assert out.shape == (2, 4 * 16 * 16), out.shape
    assert out.dtype == x.dtype
    np.testing.assert_array_equal(np.asarray(out), np.asarray(ref))
    np.testing.assert_array_equal(np.asarray(fast), np.asarray(ref))

    # Exercise the multi-DMA window (row chunking) with a tiny chunk budget.
    x2 = jax.random.normal(jax.random.PRNGKey(1), (8, 4, 16, 16), jnp.float32)
    out2 = jax.block_until_ready(flatten(x2, min_chunk_bytes=4096))
    np.testing.assert_array_equal(
        np.asarray(out2), np.asarray(jnp.reshape(x2, (8, -1))))

    # Exercise row + column chunking (lane-aligned column slices).
    x3 = jax.random.normal(jax.random.PRNGKey(2), (2, 8, 16, 16), jnp.float32)
    out3 = jax.block_until_ready(flatten(x3, min_chunk_bytes=2048))
    np.testing.assert_array_equal(
        np.asarray(out3), np.asarray(jnp.reshape(x3, (2, -1))))

    print("KERNEL_OK")
</pallas_src>

<mosaic_0001>
module attributes {stable_mosaic.version = 11 : i64} {
  func.func @_flatten_dma_kernel(%arg0: memref<2x1024xf32, #tpu.memory_space<any>>, %arg1: memref<2x1024xf32, #tpu.memory_space<any>>, %arg2: memref<4x!tpu.dma_semaphore, #tpu.memory_space<semaphore_mem>>) attributes {dimension_semantics = [], scalar_prefetch = 0 : i64, scratch_operands = 1 : i64, tpu.core_type = #tpu.core_type<tc>} {
    %c0_i32 = arith.constant 0 : i32
    %c0_i32_0 = arith.constant 0 : i32
    %c0_i32_1 = arith.constant 0 : i32
    %0 = tpu.memref_slice %arg0[%c0_i32_0, %c0_i32_1] : memref<2x1024xf32, #tpu.memory_space<any>> -> memref<2x1024xf32, #tpu.memory_space<any>>
    %c0_i32_2 = arith.constant 0 : i32
    %c0_i32_3 = arith.constant 0 : i32
    %1 = tpu.memref_slice %arg1[%c0_i32_2, %c0_i32_3] : memref<2x1024xf32, #tpu.memory_space<any>> -> memref<2x1024xf32, #tpu.memory_space<any>>
    %2 = tpu.memref_slice %arg2[%c0_i32] : memref<4x!tpu.dma_semaphore, #tpu.memory_space<semaphore_mem>> -> memref<1x!tpu.dma_semaphore, #tpu.memory_space<semaphore_mem>>
    %3 = tpu.memref_squeeze %2 : memref<1x!tpu.dma_semaphore, #tpu.memory_space<semaphore_mem>> -> memref<!tpu.dma_semaphore, #tpu.memory_space<semaphore_mem>>
    tpu.enqueue_dma source(%0 : memref<2x1024xf32, #tpu.memory_space<any>>) target(%1 : memref<2x1024xf32, #tpu.memory_space<any>>) target_semaphore(%3 : memref<!tpu.dma_semaphore, #tpu.memory_space<semaphore_mem>>)
    %c0_i32_4 = arith.constant 0 : i32
    %c0_i32_5 = arith.constant 0 : i32
    %c0_i32_6 = arith.constant 0 : i32
    %4 = tpu.memref_slice %arg0[%c0_i32_5, %c0_i32_6] : memref<2x1024xf32, #tpu.memory_space<any>> -> memref<2x1024xf32, #tpu.memory_space<any>>
    %c0_i32_7 = arith.constant 0 : i32
    %c0_i32_8 = arith.constant 0 : i32
    %5 = tpu.memref_slice %arg1[%c0_i32_7, %c0_i32_8] : memref<2x1024xf32, #tpu.memory_space<any>> -> memref<2x1024xf32, #tpu.memory_space<any>>
    %6 = tpu.memref_slice %arg2[%c0_i32_4] : memref<4x!tpu.dma_semaphore, #tpu.memory_space<semaphore_mem>> -> memref<1x!tpu.dma_semaphore, #tpu.memory_space<semaphore_mem>>
    %7 = tpu.memref_squeeze %6 : memref<1x!tpu.dma_semaphore, #tpu.memory_space<semaphore_mem>> -> memref<!tpu.dma_semaphore, #tpu.memory_space<semaphore_mem>>
    tpu.wait_dma2 semaphore(%7 : memref<!tpu.dma_semaphore, #tpu.memory_space<semaphore_mem>>) src(%4 : memref<2x1024xf32, #tpu.memory_space<any>>) dst(%5 : memref<2x1024xf32, #tpu.memory_space<any>>)
    return
  }
}

</mosaic_0001>

<bundles_post_ra>
// kernel: tpu_custom_call.1
= control target key start
LH: loop header
LB: loop body
LE: loop exit
PB: predicated region body
PF: predicated region fallthrough
CT: control target
= control target key end

     0   :  { %s59_s6 = smov [#allocation2]   ;;  %s60_s7 = smov [#allocation3]   ;;  %s78_s0 = inlined_call_operand.hbm [shape: f32[2,1024], index: 0, kind: input, shape index: {}]   ;;  %s79_s1 = inlined_call_operand.hbm [shape: f32[2,1024], index: 1, kind: output, shape index: {}]  }
   0x1   :  { %s61_s8 = smov 0  }
   0x2   :  { %18 = dma.general %s78_s0, 256, %s79_s1, %s59_s6, %s60_s7, [#allocation4], %s61_s8, 0  }
   0x3   :  { %57 = dma.done.wait [#allocation2], 256 }
   0x4   :  { %58 = vsyncadd [#allocation2], 4294967040 }
   0x5   :  { %23 = vsyncmov [#allocation2] }
   0x8   :  { %s24_s13 = vpop.sfrf %23 }
   0x9   :  { %p50_p0 = scmp.ne.s32.totalorder %s24_s13, 0 }
   0xb   :  { %28 = shalt.err (%p50_p0)  }
   0xc   :  { %30 = vsyncmov [#allocation2 + $0x1] }
   0xf   :  { %s31_s14 = vpop.sfrf %30 }
  0x10   :  { %p51_p1 = scmp.ne.s32.totalorder %s31_s14, 0 }
  0x12   :  { %35 = shalt.err (%p51_p1)  }
  0x13   :  { %37 = vsyncmov [#allocation2 + $0x2] }
  0x16   :  { %s38_s15 = vpop.sfrf %37 }
  0x17   :  { %p52_p2 = scmp.ne.s32.totalorder %s38_s15, 0 }
  0x19   :  { %42 = shalt.err (%p52_p2)  }
  0x1a   :  { %44 = vsyncmov [#allocation2 + $0x3] }
  0x1d   :  { %s45_s16 = vpop.sfrf %44 }
  0x1e   :  { %p53_p3 = scmp.ne.s32.totalorder %s45_s16, 0 }
  0x20   :  { %49 = shalt.err (%p53_p3)  }

</bundles_post_ra>
